<compile_context>
chip_gen: v5e
topology: v5e:2x2
jax: 0.10.0
libtpu: 0.0.40
codegen_flags: <defaults>
</compile_context>

<pallas_src>
import functools

import jax
import jax.numpy as jnp
from jax.experimental import pallas as pl
from jax.experimental.pallas import tpu as pltpu

_LANES = 128
_SUBLANES = 8


def _cdiv(a, b):
    return -(-a // b)


def _round_up(x, m):
    return _cdiv(x, m) * m


def _num_core_splits():
    """2-way 'parallel' leading grid axis only on dual-TensorCore (v7x) chips."""
    try:
        kind = jax.devices()[0].device_kind.lower()
    except Exception:
        return 1
    return 2 if ("v7" in kind or "7x" in kind) else 1


def _lane_dense_view(e):
    """Free row-major relayout to a lane-dense (rows, 128) view when possible."""
    total = 1
    for d in e.shape:
        total *= int(d)
    if total % _LANES == 0:
        return e.reshape(total // _LANES, _LANES)
    # Fallback: (rows, D) with the full (possibly lane-sparse) last dim.
    return e.reshape(e.shape[0], -1)


def _bpr_kernel(*refs, num_embeds, rows, reg_scale, inv_n, n_tiles):
    pos_ref, neg_ref = refs[0], refs[1]
    embed_refs = refs[2:2 + num_embeds]
    out_ref = refs[2 + num_embeds]
    acc_ref = refs[3 + num_embeds] if num_embeds else None

    c = pl.program_id(0)   # core split ("parallel")
    i = pl.program_id(1)   # reduction step over row tiles ("arbitrary")

    if num_embeds:
        @pl.when(i == 0)
        def _init():
            acc_ref[...] = jnp.zeros_like(acc_ref)

        tr, lanes = acc_ref.shape
        # Fused L2 partial: pure VPU multiply-adds, no per-step reduce.
        sq = None
        for er in embed_refs:
            v = er[...].astype(jnp.float32)
            sq = v * v if sq is None else sq + v * v
        # Tail / out-of-range masking from the *unclamped* logical block index.
        # where (not multiply): edge-block contents are unspecified (may be NaN/Inf).
        row0 = (c * n_tiles + i) * tr
        row_ids = row0 + jax.lax.broadcasted_iota(jnp.int32, (tr, lanes), 0)
        acc_ref[...] = acc_ref[...] + jnp.where(row_ids < rows, sq, 0.0)

    @pl.when(i == n_tiles - 1)
    def _finalize():
        reg_sum = jnp.sum(acc_ref[...]) if num_embeds else jnp.float32(0.0)
        # BPR term: exact reference formulation log(sigmoid(pos - neg) + 1e-8).
        pos = pos_ref[...].astype(jnp.float32)
        neg = neg_ref[...].astype(jnp.float32)
        sig = 1.0 / (1.0 + jnp.exp(neg - pos))
        bpr_sum = jnp.sum(jnp.log(sig + 1e-8))
        # Scores are not split across cores: only split 0 contributes BPR.
        bpr_sum = jnp.where(c == 0, bpr_sum, jnp.float32(0.0))
        partial = reg_scale * reg_sum - inv_n * bpr_sum
        out_ref[...] = jnp.full(out_ref.shape, partial, dtype=out_ref.dtype)


def bpr_loss(pos_scores, neg_scores, user_embed=None, pos_item_embed=None,
             neg_item_embed=None, reg_weight: float = 1e-5, *,
             max_tile_rows=None):
    """Pallas-backed BPR loss.  pos/neg scores: (B,); *_embed: (B, D) or None."""
    batch0 = int(pos_scores.shape[0])
    n_scores = 1
    for d in pos_scores.shape:
        n_scores *= int(d)

    pos2 = pos_scores.reshape(1, -1)
    neg2 = neg_scores.reshape(1, -1)

    provided = [e for e in (user_embed, pos_item_embed, neg_item_embed)
                if e is not None]
    fused, extra = [], []
    if provided:
        primary = provided[0].shape
        for e in provided:
            (fused if e.shape == primary else extra).append(e)

    num_embeds = len(fused)
    splits = _num_core_splits() if num_embeds else 1

    in_arrays = [pos2, neg2]
    score_spec = pl.BlockSpec((1, pos2.shape[1]), lambda c, i: (0, 0))
    in_specs = [score_spec, score_spec]
    scratch_shapes = []

    if num_embeds:
        views = [_lane_dense_view(e) for e in fused]
        R, L = (int(views[0].shape[0]), int(views[0].shape[1]))
        itemsize = jnp.dtype(views[0].dtype).itemsize

        # Generation-aware tile: 2 pipeline buffers per streamed embedding plus
        # the resident f32 accumulator, kept under ~24 MiB (fits v7x's scoped
        # VMEM; ample headroom on v5e/v6e with the 64 MiB limit below).
        budget = 24 * 1024 * 1024
        per_row = num_embeds * L * itemsize * 2 + L * 4
        cap = max(_SUBLANES, (budget // per_row) // _SUBLANES * _SUBLANES)
        tr = min(_round_up(max(_cdiv(R, splits), 1), _SUBLANES), cap)
        if max_tile_rows is not None:
            tr = min(tr, max(_SUBLANES, (max_tile_rows // _SUBLANES) * _SUBLANES))
        n_tiles = _cdiv(R, splits * tr)
        last_block = _cdiv(R, tr) - 1   # clamp so DMAs never go fully OOB

        embed_spec = pl.BlockSpec(
            (tr, L),
            lambda c, i: (jnp.minimum(c * n_tiles + i, last_block), 0))
        in_arrays += views
        in_specs += [embed_spec] * num_embeds
        scratch_shapes = [pltpu.VMEM((tr, L), jnp.float32)]
        embed_elems = sum(int(v.size) for v in views)
        embed_bytes = sum(int(v.size) * jnp.dtype(v.dtype).itemsize for v in views)
    else:
        R, n_tiles = 0, 1
        embed_elems, embed_bytes = 0, 0

    kernel = functools.partial(
        _bpr_kernel,
        num_embeds=num_embeds,
        rows=R,
        reg_scale=float(reg_weight) / float(batch0),
        inv_n=1.0 / float(n_scores),
        n_tiles=n_tiles,
    )

    score_bytes = 2 * n_scores * jnp.dtype(pos2.dtype).itemsize
    out = pl.pallas_call(
        kernel,
        out_shape=jax.ShapeDtypeStruct((splits, _SUBLANES, _LANES), jnp.float32),
        grid=(splits, n_tiles),
        in_specs=in_specs,
        out_specs=pl.BlockSpec((1, _SUBLANES, _LANES), lambda c, i: (c, 0, 0)),
        scratch_shapes=scratch_shapes,
        compiler_params=pltpu.CompilerParams(
            dimension_semantics=("parallel", "arbitrary"),
            vmem_limit_bytes=64 * 1024 * 1024,
        ),
        cost_estimate=pl.CostEstimate(
            flops=2 * embed_elems + 6 * n_scores,
            transcendentals=2 * n_scores,
            bytes_accessed=int(embed_bytes + score_bytes
                               + splits * _SUBLANES * _LANES * 4),
        ),
    )(*in_arrays)

    loss = jnp.sum(out[:, 0, 0])

    # Rare case: an embedding whose shape differs from the others falls back to
    # a plain XLA reduction (exact, just not fused into the streaming kernel).
    for e in extra:
        loss = loss + (float(reg_weight) / float(batch0)) * jnp.sum(
            jnp.square(e.astype(jnp.float32)))
    return loss


def _reference(pos, neg, u=None, p=None, n=None, reg_weight=1e-5):
    bpr = -jnp.mean(jnp.log(jax.nn.sigmoid(pos - neg) + 1e-8))
    reg = jnp.float32(0.0)
    for e in (u, p, n):
        if e is not None:
            reg = reg + jnp.sum(jnp.square(e.astype(jnp.float32)))
    return bpr + reg_weight * reg / pos.shape[0]


if __name__ == "__main__":
    key = jax.random.PRNGKey(0)
    keys = jax.random.split(key, 16)

    # 1) small case, all embeddings, lane-dense fast path (B*D % 128 == 0)
    B, D = 8, 32
    ps = jax.random.normal(keys[0], (B,), jnp.float32)
    ns = jax.random.normal(keys[1], (B,), jnp.float32)
    ue = jax.random.normal(keys[2], (B, D), jnp.float32) * 0.1
    pe = jax.random.normal(keys[3], (B, D), jnp.float32) * 0.1
    ne = jax.random.normal(keys[4], (B, D), jnp.float32) * 0.1
    out1 = jax.block_until_ready(bpr_loss(ps, ns, ue, pe, ne, reg_weight=1e-5))
    ref1 = _reference(ps, ns, ue, pe, ne, reg_weight=1e-5)
    assert jnp.allclose(out1, ref1, rtol=1e-5, atol=1e-6), (out1, ref1)

    # 2) forced small tile -> multi-tile accumulation + partial edge block masking
    B2, D2 = 300, 64    # 300*64/128 = 150 rows, not a multiple of the 64-row tile
    ps2 = jax.random.normal(keys[5], (B2,), jnp.float32)
    ns2 = jax.random.normal(keys[6], (B2,), jnp.float32)
    ue2 = jax.random.normal(keys[7], (B2, D2), jnp.float32) * 0.1
    pe2 = jax.random.normal(keys[8], (B2, D2), jnp.float32) * 0.1
    ne2 = jax.random.normal(keys[9], (B2, D2), jnp.float32) * 0.1
    out2 = jax.block_until_ready(
        bpr_loss(ps2, ns2, ue2, pe2, ne2, reg_weight=1e-5, max_tile_rows=64))
    ref2 = _reference(ps2, ns2, ue2, pe2, ne2, reg_weight=1e-5)
    assert jnp.allclose(out2, ref2, rtol=1e-5, atol=1e-6), (out2, ref2)

    # 3) no embeddings at all: L2 path (and its streams) skipped entirely
    out3 = jax.block_until_ready(bpr_loss(ps2, ns2, reg_weight=1e-5))
    ref3 = _reference(ps2, ns2, reg_weight=1e-5)
    assert jnp.allclose(out3, ref3, rtol=1e-5, atol=1e-6), (out3, ref3)

    # 4) lane-sparse fallback (B*D not a multiple of 128) + block taller than array
    B4, D4 = 6, 20
    ps4 = jax.random.normal(keys[10], (B4,), jnp.float32)
    ns4 = jax.random.normal(keys[11], (B4,), jnp.float32)
    ue4 = jax.random.normal(keys[12], (B4, D4), jnp.float32) * 0.1
    out4 = jax.block_until_ready(bpr_loss(ps4, ns4, ue4, reg_weight=1e-5))
    ref4 = _reference(ps4, ns4, ue4, reg_weight=1e-5)
    assert jnp.allclose(out4, ref4, rtol=1e-5, atol=1e-6), (out4, ref4)

    print("KERNEL_OK")
</pallas_src>

<mosaic_0001>
module attributes {stable_mosaic.version = 11 : i64} {
  func.func @_bpr_kernel(%arg0: i32, %arg1: i32, %arg2: memref<1x8xf32, #tpu.memory_space<vmem>>, %arg3: memref<1x8xf32, #tpu.memory_space<vmem>>, %arg4: memref<8x128xf32, #tpu.memory_space<vmem>>, %arg5: memref<8x128xf32, #tpu.memory_space<vmem>>, %arg6: memref<8x128xf32, #tpu.memory_space<vmem>>, %arg7: memref<1x8x128xf32, #tpu.memory_space<vmem>>, %arg8: memref<8x128xf32, #tpu.memory_space<vmem>>) attributes {dimension_semantics = [#tpu.dimension_semantics<parallel>, #tpu.dimension_semantics<arbitrary>], iteration_bounds = array<i64: 1, 1>, scalar_prefetch = 0 : i64, scratch_operands = 1 : i64, tpu.core_type = #tpu.core_type<tc>, window_params = [{pipeline_mode = #tpu.pipeline_mode<synchronous>, transform_indices = @transform_0, window_bounds = array<i64: 1, 8>}, {pipeline_mode = #tpu.pipeline_mode<synchronous>, transform_indices = @transform_1, window_bounds = array<i64: 1, 8>}, {transform_indices = @transform_2, window_bounds = array<i64: 8, 128>}, {transform_indices = @transform_3, window_bounds = array<i64: 8, 128>}, {transform_indices = @transform_4, window_bounds = array<i64: 8, 128>}, {transform_indices = @transform_5, window_bounds = array<i64: 1, 8, 128>}]} {
    %c0_i32 = arith.constant 0 : i32
    %0 = arith.cmpi eq, %arg1, %c0_i32 : i32
    %1 = arith.extui %0 : i1 to i32
    %c0_i32_0 = arith.constant 0 : i32
    %2 = arith.cmpi ne, %1, %c0_i32_0 : i32
    scf.if %2 {
      %cst_12 = arith.constant 0.000000e+00 : f32
      %27 = vector.broadcast %cst_12 : f32 to vector<8x128xf32>
      %c0_13 = arith.constant 0 : index
      %c0_14 = arith.constant 0 : index
      %28 = vector.load %arg8[%c0_13, %c0_14] : memref<8x128xf32, #tpu.memory_space<vmem>>, vector<8x128xf32>
      tpu.vector_store %arg8[%c0_13, %c0_14], %27 {strides = array<i32>} : memref<8x128xf32, #tpu.memory_space<vmem>>, vector<8x128xf32>,
    } else {
    }
    %c0 = arith.constant 0 : index
    %c0_1 = arith.constant 0 : index
    %3 = vector.load %arg4[%c0, %c0_1] : memref<8x128xf32, #tpu.memory_space<vmem>>, vector<8x128xf32>
    %4 = arith.mulf %3, %3 : vector<8x128xf32>
    %c0_2 = arith.constant 0 : index
    %c0_3 = arith.constant 0 : index
    %5 = vector.load %arg5[%c0_2, %c0_3] : memref<8x128xf32, #tpu.memory_space<vmem>>, vector<8x128xf32>
    %6 = arith.mulf %5, %5 : vector<8x128xf32>
    %7 = arith.addf %4, %6 : vector<8x128xf32>
    %c0_4 = arith.constant 0 : index
    %c0_5 = arith.constant 0 : index
    %8 = vector.load %arg6[%c0_4, %c0_5] : memref<8x128xf32, #tpu.memory_space<vmem>>, vector<8x128xf32>
    %9 = arith.mulf %8, %8 : vector<8x128xf32>
    %10 = arith.addf %7, %9 : vector<8x128xf32>
    %c1_i32 = arith.constant 1 : i32
    %11 = arith.muli %arg0, %c1_i32 : i32
    %12 = arith.addi %11, %arg1 : i32
    %c8_i32 = arith.constant 8 : i32
    %13 = arith.muli %12, %c8_i32 : i32
    %14 = tpu.iota {dimensions = array<i32: 0>} : vector<8x128xi32>
    %15 = vector.broadcast %13 : i32 to vector<8x128xi32>
    %16 = arith.addi %15, %14 : vector<8x128xi32>
    %c0_6 = arith.constant 0 : index
    %c0_7 = arith.constant 0 : index
    %17 = vector.load %arg8[%c0_6, %c0_7] : memref<8x128xf32, #tpu.memory_space<vmem>>, vector<8x128xf32>
    %c2_i32 = arith.constant 2 : i32
    %18 = vector.broadcast %c2_i32 : i32 to vector<8x128xi32>
    %19 = arith.cmpi slt, %16, %18 : vector<8x128xi32>
    %cst = arith.constant 0.000000e+00 : f32
    %20 = vector.broadcast %cst : f32 to vector<8x128xf32>
    %21 = arith.select %19, %10, %20 : vector<8x128xi1>, vector<8x128xf32>
    %22 = arith.addf %17, %21 : vector<8x128xf32>
    %c0_8 = arith.constant 0 : index
    %c0_9 = arith.constant 0 : index
    %23 = vector.load %arg8[%c0_8, %c0_9] : memref<8x128xf32, #tpu.memory_space<vmem>>, vector<8x128xf32>
    tpu.vector_store %arg8[%c0_8, %c0_9], %22 {strides = array<i32>} : memref<8x128xf32, #tpu.memory_space<vmem>>, vector<8x128xf32>,
    %c0_i32_10 = arith.constant 0 : i32
    %24 = arith.cmpi eq, %arg1, %c0_i32_10 : i32
    %25 = arith.extui %24 : i1 to i32
    %c0_i32_11 = arith.constant 0 : i32
    %26 = arith.cmpi ne, %25, %c0_i32_11 : i32
    scf.if %26 {
      %c0_12 = arith.constant 0 : index
      %c0_13 = arith.constant 0 : index
      %27 = vector.load %arg8[%c0_12, %c0_13] : memref<8x128xf32, #tpu.memory_space<vmem>>, vector<8x128xf32>
      %28 = vector.shape_cast %27 : vector<8x128xf32> to vector<1x8x128xf32>
      %cst_14 = arith.constant dense<0.000000e+00> : vector<1xf32>
      %29 = vector.multi_reduction <add>, %28, %cst_14 [1, 2] : vector<1x8x128xf32> to vector<1xf32>
      %30 = vector.shape_cast %29 : vector<1xf32> to vector<1x1x1xf32>
      %31 = vector.extract %30[0, 0, 0] : f32 from vector<1x1x1xf32>
      %c0_15 = arith.constant 0 : index
      %c0_16 = arith.constant 0 : index
      %32 = vector.load %arg2[%c0_15, %c0_16] : memref<1x8xf32, #tpu.memory_space<vmem>>, vector<1x8xf32>
      %c0_17 = arith.constant 0 : index
      %c0_18 = arith.constant 0 : index
      %33 = vector.load %arg3[%c0_17, %c0_18] : memref<1x8xf32, #tpu.memory_space<vmem>>, vector<1x8xf32>
      %34 = arith.subf %33, %32 : vector<1x8xf32>
      %35 = math.exp %34 : vector<1x8xf32>
      %cst_19 = arith.constant 1.000000e+00 : f32
      %36 = vector.broadcast %cst_19 : f32 to vector<1x8xf32>
      %37 = arith.addf %36, %35 : vector<1x8xf32>
      %cst_20 = arith.constant 1.000000e+00 : f32
      %38 = vector.broadcast %cst_20 : f32 to vector<1x8xf32>
      %39 = arith.divf %38, %37 : vector<1x8xf32>
      %cst_21 = arith.constant 9.99999993E-9 : f32
      %40 = vector.broadcast %cst_21 : f32 to vector<1x8xf32>
      %41 = arith.addf %39, %40 : vector<1x8xf32>
      %42 = math.log %41 : vector<1x8xf32>
      %43 = vector.shape_cast %42 : vector<1x8xf32> to vector<1x1x8xf32>
      %cst_22 = arith.constant dense<0.000000e+00> : vector<1xf32>
      %44 = vector.multi_reduction <add>, %43, %cst_22 [1, 2] : vector<1x1x8xf32> to vector<1xf32>
      %45 = vector.shape_cast %44 : vector<1xf32> to vector<1x1x1xf32>
      %46 = vector.extract %45[0, 0, 0] : f32 from vector<1x1x1xf32>
      %c0_i32_23 = arith.constant 0 : i32
      %47 = arith.cmpi eq, %arg0, %c0_i32_23 : i32
      %cst_24 = arith.constant 0.000000e+00 : f32
      %48 = arith.select %47, %46, %cst_24 : f32
      %cst_25 = arith.constant 1.250000e-06 : f32
      %49 = arith.mulf %cst_25, %31 : f32
      %cst_26 = arith.constant 1.250000e-01 : f32
      %50 = arith.mulf %cst_26, %48 : f32
      %51 = arith.subf %49, %50 : f32
      %52 = vector.broadcast %51 : f32 to vector<1x8x128xf32>
      %c0_27 = arith.constant 0 : index
      %c0_28 = arith.constant 0 : index
      %c0_29 = arith.constant 0 : index
      %53 = vector.load %arg7[%c0_27, %c0_28, %c0_29] : memref<1x8x128xf32, #tpu.memory_space<vmem>>, vector<1x8x128xf32>
      tpu.vector_store %arg7[%c0_27, %c0_28, %c0_29], %52 {strides = array<i32>} : memref<1x8x128xf32, #tpu.memory_space<vmem>>, vector<1x8x128xf32>,
    } else {
    }
    return
  }
  func.func @transform_0(%arg0: i32, %arg1: i32) -> (i32, i32) {
    %c0_i32 = arith.constant 0 : i32
    %c0_i32_0 = arith.constant 0 : i32
    %c0_i32_1 = arith.constant 0 : i32
    return %c0_i32, %c0_i32_0 : i32, i32
  }
  func.func @transform_1(%arg0: i32, %arg1: i32) -> (i32, i32) {
    %c0_i32 = arith.constant 0 : i32
    %c0_i32_0 = arith.constant 0 : i32
    %c0_i32_1 = arith.constant 0 : i32
    return %c0_i32, %c0_i32_0 : i32, i32
  }
  func.func @transform_2(%arg0: i32, %arg1: i32) -> (i32, i32) {
    %c1_i32 = arith.constant 1 : i32
    %0 = arith.muli %arg0, %c1_i32 : i32
    %1 = arith.addi %0, %arg1 : i32
    %c0_i32 = arith.constant 0 : i32
    %2 = arith.minsi %1, %c0_i32 : i32
    %c0_i32_0 = arith.constant 0 : i32
    %c0_i32_1 = arith.constant 0 : i32
    return %2, %c0_i32_0 : i32, i32
  }
  func.func @transform_3(%arg0: i32, %arg1: i32) -> (i32, i32) {
    %c1_i32 = arith.constant 1 : i32
    %0 = arith.muli %arg0, %c1_i32 : i32
    %1 = arith.addi %0, %arg1 : i32
    %c0_i32 = arith.constant 0 : i32
    %2 = arith.minsi %1, %c0_i32 : i32
    %c0_i32_0 = arith.constant 0 : i32
    %c0_i32_1 = arith.constant 0 : i32
    return %2, %c0_i32_0 : i32, i32
  }
  func.func @transform_4(%arg0: i32, %arg1: i32) -> (i32, i32) {
    %c1_i32 = arith.constant 1 : i32
    %0 = arith.muli %arg0, %c1_i32 : i32
    %1 = arith.addi %0, %arg1 : i32
    %c0_i32 = arith.constant 0 : i32
    %2 = arith.minsi %1, %c0_i32 : i32
    %c0_i32_0 = arith.constant 0 : i32
    %c0_i32_1 = arith.constant 0 : i32
    return %2, %c0_i32_0 : i32, i32
  }
  func.func @transform_5(%arg0: i32, %arg1: i32) -> (i32, i32, i32) {
    %c0_i32 = arith.constant 0 : i32
    %c0_i32_0 = arith.constant 0 : i32
    %c0_i32_1 = arith.constant 0 : i32
    return %arg0, %c0_i32, %c0_i32_0 : i32, i32, i32
  }
}

</mosaic_0001>

<bundles_post_ra>
// kernel: tpu_custom_call.1
= control target key start
LH: loop header
LB: loop body
LE: loop exit
PB: predicated region body
PF: predicated region fallthrough
CT: control target
= control target key end

     0   :  { %10 = vsyncpa [#allocation4], 0  ;;  %s464_s0 = inlined_call_operand.hbm [shape: f32[1,8], index: 0, kind: input, shape index: {}]   ;;  %s465_s1 = inlined_call_operand.hbm [shape: f32[1,8], index: 1, kind: input, shape index: {}]   ;;  %s466_s2 = inlined_call_operand.hbm [shape: f32[2,128], index: 2, kind: input, shape index: {}]   ;;  %s467_s3 = inlined_call_operand.vmem [shape: f32[2,128], index: 3, kind: input, shape index: {}]   ;;  %s468_s4 = inlined_call_operand.hbm [shape: f32[2,128], index: 4, kind: input, shape index: {}]   ;;  %s469_s5 = inlined_call_operand.hbm [shape: f32[1,8,128], index: 5, kind: output, shape index: {}]  }
   0x1   :  { %11 = vsyncpa [#allocation7], 0 }
   0x2   :  { %12 = vsyncpa [#allocation10], 0 }
   0x3   :  { %13 = vsyncpa [#allocation5], 0  ;;  %s19_s20 = sshll.u32 %s464_s0, 4  ;;  %s409_s21 = smov [#allocation3]   ;;  %s20_s20 = int_to_ptr.hbm [resolvable:$true] %s19_s20 }
   0x4   :  { %s21_s22 = sshll.u32 %s409_s21, 4  ;;  %s30_s25 = sshll.u32 %s465_s1, 4  ;;  %s22_s22 = int_to_ptr.vmem [resolvable:$true] %s21_s22  ;;  %s31_s25 = int_to_ptr.hbm [resolvable:$true] %s30_s25 }
   0x5   :  { %24 = dma.hbm_to_vmem [thread:$0]  %s20_s20, 16, %s22_s22, [#allocation4]  }
   0x6   :  { %s410_s26 = smov [#allocation6]  }
   0x7   :  { %s32_s27 = sshll.u32 %s410_s26, 4  ;;  %s33_s27 = int_to_ptr.vmem [resolvable:$true] %s32_s27 }
   0x8   :  { %35 = dma.hbm_to_vmem [thread:$0]  %s31_s25, 16, %s33_s27, [#allocation7]  }
   0x9   :  { %46 = vsyncadd [#allocation7], 96  ;;  %s51_s30 = sshll.u32 %s466_s2, 4  ;;  %s411_s0 = smov [#allocation8]   ;;  %s52_s30 = int_to_ptr.hbm [resolvable:$true] %s51_s30 }
   0xa   :  { %s53_s6 = sshll.u32 %s411_s0, 4  ;;  %s412_s7 = smov 32   ;;  %s54_s6 = int_to_ptr.vmem [resolvable:$true] %s53_s6 }
   0xb   :  { %s413_s8 = smov 2  }
   0xc   :  { %59 = dma.hbm_to_vmem [thread:$0]  %s52_s30, 32, %s54_s6, [#allocation7], %s412_s7, %s412_s7, %s413_s8  }
   0xd   :  { %88 = vsyncadd [#allocation10], 96  ;;  %s93_s10 = sshll.u32 %s468_s4, 4  ;;  %s414_s11 = smov [#allocation9]   ;;  %s94_s10 = int_to_ptr.hbm [resolvable:$true] %s93_s10 }
   0xe   :  { %s95_s12 = sshll.u32 %s414_s11, 4  ;;  %s96_s12 = int_to_ptr.vmem [resolvable:$true] %s95_s12 }
   0xf   :  { %101 = dma.hbm_to_vmem [thread:$0]  %s94_s10, 32, %s96_s12, [#allocation10], %s412_s7, %s412_s7, %s413_s8  }
  0x10   :  { %401 = dma.done.wait [#allocation4], 16  }
  0x11   :  { %402 = vsyncadd [#allocation4], 4294967280 }
  0x12   :  { %403 = dma.done.wait [#allocation7], 144  }
  0x13   :  { %404 = vsyncadd [#allocation7], 4294967152 }
  0x14   :  { %405 = dma.done.wait [#allocation10], 128  }
  0x15   :  { %406 = vsyncadd [#allocation10], 4294967168  ;;  %v171_v0 = vlaneseq  ;;  %v161_v1 = vld [vmem:[#allocation8] sm:$0xff]  ;;  %v163_v2 = vld [vmem:[%s467_s3] sm:$0xff]  ;;  %vm217_vm5 = vcmask 57344   ;;  %s415_s4 = smov [#allocation11]  }
  0x16   :  { %v166_v3 = vld [vmem:[#allocation9] sm:$0xff]  ;;  %v162_v5 = vmul.f32 %v161_v1, %v161_v1  ;;  %v164_v6 = vmul.f32 %v163_v2, %v163_v2  ;;  %v193_v8 = vld [vmem:[#allocation3] sm:$0x1]  ;;  %v194_v9 = vld [vmem:[#allocation6] sm:$0x1]  ;;  %s240_s14 = sshll.u32 %s415_s4, 4  ;;  %s241_s14 = int_to_ptr.vmem [resolvable:$true] %s240_s14 }
  0x17   :  { %v172_v4 = vshrl.u32 %v171_v0, 7  ;;  %v167_v7 = vmul.f32 %v166_v3, %v166_v3  ;;  %v195_v10 = vsub.f32 %v194_v9, %v193_v8  ;;  %s242_s20 = sshll.u32 %s469_s5, 4  ;;  %s243_s20 = int_to_ptr.hbm [resolvable:$true] %s242_s20 }
  0x18   :  { %v165_v11 = vadd.f32 %v164_v6, %v162_v5 }
  0x19   :  { %vm176_vm0 = vcmp.lt.s32.totalorder %v172_v4, 2  ;;  %v196_v12 = vmul.f32 1.442695, %v195_v10 }
  0x1a   :  { %v168_v13 = vadd.f32 %v167_v7, %v165_v11 }
  0x1b   :  { %275 = vpow2.f32 %v196_v12 }
  0x1c   :  { %v177_v14 = vsel %vm176_vm0, %v168_v13, 0.0 }
  0x1d   :  { %184 = vadd.xlane.f32.xlu0 %v177_v14 }
  0x21   :  { %v276_v15 = vpop.eup %275 }
  0x22   :  { %v198_v16 = vadd.f32 1.0, %v276_v15 }
  0x24   :  { %277 = vrcp.f32 %v198_v16  ;;  %v210_v19 = vand.u32 2147483648, %v198_v16  ;;  %vm204_vm1 = vweird.f32 %v198_v16  ;;  %v208_v21 = vand.u32 2147483647, %v198_v16 }
  0x26   :  { %v211_v23 = vor.u32 1.1754944e-38, %v210_v19  ;;  %vm209_vm4 = vcmp.eq.f32.partialorder %v208_v21, 8.507059e+37 }
  0x2a   :  { %v278_v17 = vpop.eup %277 }
  0x2b   :  { %v200_v18 = vmul.f32 %v278_v17, %v198_v16  ;;  %vm205_vm2 = vweird.f32 %v278_v17 }
  0x2c   :  { %vm206_vm3 = vmor %vm204_vm1, %vm205_vm2 }
  0x2d   :  { %v201_v20 = vsub.f32 1.0, %v200_v18 }
  0x2f   :  { %v202_v22 = vmul.f32 %v278_v17, %v201_v20 }
  0x31   :  { %v203_v24 = vadd.f32 %v278_v17, %v202_v22 }
  0x33   :  { %v207_v25 = vsel %vm206_vm3, %v278_v17, %v203_v24 }
  0x34   :  { %v212_v26 = vsel %vm209_vm4, %v211_v23, %v207_v25 }
  0x35   :  { %v214_v27 = vadd.f32 1e-08, %v212_v26 }
  0x37   :  { %279 = vlog2.f32 %v214_v27 }
  0x3d   :  { %v280_v28 = vpop.eup %279 }
  0x3e   :  { %v216_v29 = vmul.f32 0.6931472, %v280_v28 }
  0x40   :  { %v218_v30 = vsel %vm217_vm5, %v216_v29, 0.0 }
  0x41   :  { %219 = vadd.xlane.f32.xlu0 %v218_v30 }
  0x90   :  { %v185_v31 = vpop.xlane.xlu0 %184 }
  0x91   :  { %v186_v32 = vrot.slane %v185_v31, 4 }
  0x93   :  { %v187_v33 = vadd.f32 %v186_v32, %v185_v31 }
  0x95   :  { %v188_v34 = vrot.slane %v187_v33, 2 }
  0x97   :  { %v189_v35 = vadd.f32 %v188_v34, %v187_v33 }
  0x99   :  { %v190_v36 = vrot.slane %v189_v35, 1 }
  0x9b   :  { %v191_v37 = vadd.f32 %v190_v36, %v189_v35 }
  0x9d   :  { %264 = vpush %v191_v37 }
  0xb4   :  { %v220_v38 = vpop.xlane.xlu0 %219 }
  0xb5   :  { %v221_v39 = vrot.slane %v220_v38, 4 }
  0xb7   :  { %v222_v40 = vadd.f32 %v221_v39, %v220_v38 }
  0xb9   :  { %v223_v41 = vrot.slane %v222_v40, 2 }
  0xbb   :  { %v224_v42 = vadd.f32 %v223_v41, %v222_v40 }
  0xbd   :  { %v225_v43 = vrot.slane %v224_v42, 1 }
  0xbf   :  { %v226_v44 = vadd.f32 %v225_v43, %v224_v42 }
  0xc1   :  { %266 = vpush %v226_v44 }
  0xce   :  { %s265_s3 = spop %264 }
  0xcf   :  { %s230_s15 = smul.f32 1.25e-06, %s265_s3 }
  0xf2   :  { %s267_s16 = spop %266 }
  0xf3   :  { %s231_s17 = smul.f32 0.125, %s267_s16 }
  0xf5   :  { %s232_s21 = ssub.f32 %s230_s15, %s231_s17 }
  0xf7   :  { %v233_v45 = vstv %s232_s21 }
  0xf8   :  { %234 = vst [vmem:[#allocation11] sm:$0xff] %v233_v45 }
  0xf9   :  { %245 = dma.vmem_to_hbm [thread:$0]  %s241_s14, 128, %s243_s20, [#allocation5]  }
  0xfa   :  { %407 = dma.done.wait [#allocation5], 128  }
  0xfb   :  { %408 = vsyncadd [#allocation5], 4294967168 }
  0xfc   :  { %250 = vsyncpa [#allocation4], 1 }
  0xfd   :  { %251 = vsyncpa [#allocation7], 1 }
  0xfe   :  { %252 = vsyncpa [#allocation10], 1 }
  0xff   :  { %253 = vsyncpa [#allocation5], 1 }

</bundles_post_ra>
